<compile_context>
chip_gen: v6e
topology: v6e:2x2x1
jax: 0.10.0
libtpu: 0.0.40
codegen_flags: <defaults>
</compile_context>

<pallas_src>
import jax
import jax.numpy as jnp
import numpy as np
from jax import lax
from jax.experimental import pallas as pl
from jax.experimental.pallas import tpu as pltpu


# ----------------------------- configuration -------------------------------
B = 2          # batch
S = 8          # seq_l
H = 32         # hidden_size
NH = 4         # num_heads
DH = H // NH   # head dim (PyTorch MultiheadAttention uses embed_dim // num_heads)
BS = B * S

OUT_W = 128            # lane-dense logits width; cols 0/1 = start/end
SLAB_W = 2 * OUT_W     # 256
ROW_WBIG = 0           # rows  0:32  -> w_big
ROW_BBIG = H           # row   32    -> b_big
ROW_WC = ROW_BBIG + 8  # rows 40:72  -> folded ctx->logits weight (H, 128)
ROW_HM = ROW_WC + H    # rows 72:104 -> head mask (NH*S, H)
SLAB_ROWS = ROW_HM + NH * S   # 104


# ------------------------------- kernel ------------------------------------
def _trigger_kernel(x_ref, bias_ref, slab_ref, out_ref):
    """Single-invocation fused attention + start/end heads, all in VMEM."""
    x = x_ref[...]                                        # (BS, H)

    w_big = slab_ref[ROW_WBIG:ROW_WBIG + H, :]            # (H, 256)
    b_big = slab_ref[ROW_BBIG:ROW_BBIG + 1, :]            # (1, 256)
    wc = slab_ref[ROW_WC:ROW_WC + H, 0:OUT_W]             # (H, 128)
    hmask = slab_ref[ROW_HM:ROW_HM + NH * S, 0:H]         # (NH*S, H)

    # one matmul: scaled Q | K | V | x-contribution to start/end logits
    big = jnp.dot(x, w_big, preferred_element_type=jnp.float32) + b_big  # (BS, 256)
    logits_x = big[:, OUT_W:]                             # (BS, 128) aligned vreg
    q = big[:, 0:H]                                       # (BS, H)  (pre-scaled)
    k = big[:, H:2 * H]
    v = big[:, 2 * H:3 * H]

    # --- scores: all heads of a batch via ONE masked matmul per batch -------
    s_tiles = []
    for b in range(B):                                    # B = 2, static
        r = slice(b * S, (b + 1) * S)
        q_rep = jnp.concatenate([q[r]] * NH, axis=0)      # (NH*S, H) sublane tile
        s_tiles.append(
            lax.dot_general(q_rep * hmask, k[r], (((1,), (1,)), ((), ())),
                            preferred_element_type=jnp.float32))  # (NH*S, S)
    scores = jnp.concatenate(s_tiles, axis=0) + bias_ref[...]     # (B*NH*S, S)

    # --- one softmax across all (b, h) tiles ---------------------------------
    m = jnp.max(scores, axis=-1, keepdims=True)
    e = jnp.exp(scores - m)
    p = e * pl.reciprocal(jnp.sum(e, axis=-1, keepdims=True), approx=True)

    # --- context: ONE matmul per batch; head-select = mask + sublane sum -----
    ctx_rows = []
    for b in range(B):
        r = slice(b * S, (b + 1) * S)
        c = jnp.dot(p[b * NH * S:(b + 1) * NH * S, :], v[r],
                    preferred_element_type=jnp.float32) * hmask    # (NH*S, H)
        acc = c[0:S, :]
        for h in range(1, NH):                            # NH = 4, static
            acc = acc + c[h * S:(h + 1) * S, :]
        ctx_rows.append(acc)                              # (S, H)
    ctx = jnp.concatenate(ctx_rows, axis=0)               # (BS, H)

    # --- folded out-projection + start/end heads, lane-dense output ----------
    logits = logits_x + jnp.dot(ctx, wc, preferred_element_type=jnp.float32)
    out_ref[...] = jax.nn.sigmoid(logits)                 # (BS, 128)


# --------------------------- one-time weight packing -------------------------
def pack_params(p):
    """Pack all weights into a single lane-dense f32 slab (call ONCE at init)."""
    scale = 1.0 / np.sqrt(DH)
    wq = np.asarray(p["wq"], np.float32) * scale
    bq = np.asarray(p["bq"], np.float32) * scale
    wk, bk = np.asarray(p["wk"], np.float32), np.asarray(p["bk"], np.float32)
    wv, bv = np.asarray(p["wv"], np.float32), np.asarray(p["bv"], np.float32)
    wo, bo = np.asarray(p["wo"], np.float32), np.asarray(p["bo"], np.float32)
    ws, bs_ = np.asarray(p["w_start"], np.float32), np.asarray(p["b_start"], np.float32)
    we, be_ = np.asarray(p["w_end"], np.float32), np.asarray(p["b_end"], np.float32)

    # Fold the attention out-projection into the start/end heads:
    #   logits = x @ Wx + ctx @ (wo @ Wa) + (bo @ Wa + b_head)
    Wx = np.stack([ws[0, :H], we[0, :H]], axis=1)          # (H, 2)
    Wa = np.stack([ws[0, H:], we[0, H:]], axis=1)          # (H, 2)
    Wc = wo @ Wa                                           # (H, 2)
    b_fold = bo[0] @ Wa + np.array([bs_[0, 0], be_[0, 0]], np.float32)  # (2,)

    w_big = np.zeros((H, SLAB_W), np.float32)
    w_big[:, 0:H] = wq
    w_big[:, H:2 * H] = wk
    w_big[:, 2 * H:3 * H] = wv
    w_big[:, OUT_W:OUT_W + 2] = Wx

    b_big = np.zeros((SLAB_W,), np.float32)
    b_big[0:H] = bq[0]
    b_big[H:2 * H] = bk[0]
    b_big[2 * H:3 * H] = bv[0]
    b_big[OUT_W:OUT_W + 2] = b_fold

    wc_pad = np.zeros((H, OUT_W), np.float32)
    wc_pad[:, 0:2] = Wc

    hmask = np.zeros((NH * S, H), np.float32)
    for h in range(NH):
        hmask[h * S:(h + 1) * S, h * DH:(h + 1) * DH] = 1.0

    slab = np.zeros((SLAB_ROWS, SLAB_W), np.float32)
    slab[ROW_WBIG:ROW_WBIG + H, :] = w_big
    slab[ROW_BBIG, :] = b_big
    slab[ROW_WC:ROW_WC + H, 0:OUT_W] = wc_pad
    slab[ROW_HM:ROW_HM + NH * S, 0:H] = hmask
    return jnp.asarray(slab)


# ------------------------------- wrapper ------------------------------------
@jax.jit
def trigger_extraction_forward(cln_embeds, attention_mask, slab):
    """cln_embeds: (B, S, H) f32; attention_mask: (B, S) f32 (1.0 = pad);
    slab: packed weights from pack_params (built once, passed through)."""
    x_flat = cln_embeds.reshape(BS, H)
    # key-padding bias, pre-broadcast to the sublane-stacked score layout
    bias = jnp.broadcast_to((attention_mask * jnp.float32(-1e9))[:, None, :],
                            (B, NH * S, S)).reshape(B * NH * S, S)

    vmem = pl.BlockSpec(memory_space=pltpu.MemorySpace.VMEM)
    out = pl.pallas_call(
        _trigger_kernel,
        out_shape=jax.ShapeDtypeStruct((BS, OUT_W), jnp.float32),
        in_specs=[vmem, vmem, vmem],
        out_specs=vmem,
    )(x_flat, bias, slab)                                  # (BS, 128)

    starts = out[:, 0].reshape(B, S, 1)
    ends = out[:, 1].reshape(B, S, 1)
    return starts, ends
    # TODO(synk): at these shapes the op is launch-bound; fuse surrounding
    # layers or batch many (B, S) instances per call for real wall-clock wins.


# --------------------------- pure-JAX reference ------------------------------
def reference_forward(x, mask, p):
    q = x @ p["wq"] + p["bq"]
    k = x @ p["wk"] + p["bk"]
    v = x @ p["wv"] + p["bv"]
    scale = 1.0 / np.sqrt(DH)

    def split_heads(t):  # (B,S,H) -> (B,NH,S,DH)
        return t.reshape(B, S, NH, DH).transpose(0, 2, 1, 3)

    qh, kh, vh = split_heads(q), split_heads(k), split_heads(v)
    scores = jnp.einsum("bhqd,bhkd->bhqk", qh, kh) * scale
    scores = scores + (mask * -1e9)[:, None, None, :]
    probs = jax.nn.softmax(scores, axis=-1)
    ctx = jnp.einsum("bhqk,bhkd->bhqd", probs, vh)
    ctx = ctx.transpose(0, 2, 1, 3).reshape(B, S, H)
    attn_out = ctx @ p["wo"] + p["bo"]

    final = jnp.concatenate([x, attn_out], axis=-1)                # (B,S,2H)
    s_log = jnp.einsum("bsd,d->bs", final, p["w_start"][0]) + p["b_start"][0, 0]
    e_log = jnp.einsum("bsd,d->bs", final, p["w_end"][0]) + p["b_end"][0, 0]
    return jax.nn.sigmoid(s_log)[..., None], jax.nn.sigmoid(e_log)[..., None]


# ------------------------------ param init ----------------------------------
def init_params(key):
    ks = jax.random.split(key, 8)
    lim_in = np.sqrt(6.0 / (H + H))        # xavier-ish for attention projections
    lim_fc = np.sqrt(6.0 / (2 * H + 1))    # xavier_uniform for fcn_start / fcn_end
    u = lambda k, shape, lim: jax.random.uniform(k, shape, jnp.float32, -lim, lim)
    return {
        "wq": u(ks[0], (H, H), lim_in), "bq": jnp.zeros((1, H), jnp.float32),
        "wk": u(ks[1], (H, H), lim_in), "bk": jnp.zeros((1, H), jnp.float32),
        "wv": u(ks[2], (H, H), lim_in), "bv": jnp.zeros((1, H), jnp.float32),
        "wo": u(ks[3], (H, H), lim_in), "bo": jnp.zeros((1, H), jnp.float32),
        "w_start": u(ks[4], (1, 2 * H), lim_fc),
        "b_start": jnp.zeros((1, 1), jnp.float32),
        "w_end": u(ks[5], (1, 2 * H), lim_fc),
        "b_end": jnp.zeros((1, 1), jnp.float32),
    }


# --------------------------------- main --------------------------------------
if __name__ == "__main__":
    key = jax.random.PRNGKey(0)
    kx, kp = jax.random.split(key)

    cln_embeds = jax.random.normal(kx, (B, S, H), jnp.float32)
    # key_padding_mask: last two positions of batch 1 are padding.
    attention_mask = jnp.zeros((B, S), jnp.float32).at[1, -2:].set(1.0)

    params = init_params(kp)
    slab = pack_params(params)          # one-time packing, outside per-call path

    starts, ends = trigger_extraction_forward(cln_embeds, attention_mask, slab)
    jax.block_until_ready((starts, ends))

    ref_s, ref_e = reference_forward(cln_embeds, attention_mask, params)
    # Tolerance covers the EUP approximate reciprocal in the softmax denominator
    # and the (exact-algebra, fp-reassociated) out-projection fold.
    np.testing.assert_allclose(np.asarray(starts), np.asarray(ref_s), rtol=1e-3, atol=1e-4)
    np.testing.assert_allclose(np.asarray(ends), np.asarray(ref_e), rtol=1e-3, atol=1e-4)

    assert starts.shape == (B, S, 1) and ends.shape == (B, S, 1)
    print("KERNEL_OK")
</pallas_src>

<mosaic_0001>
module attributes {stable_mosaic.version = 11 : i64} {
  func.func @_trigger_kernel(%arg0: memref<16x32xf32, #tpu.memory_space<vmem>>, %arg1: memref<64x8xf32, #tpu.memory_space<vmem>>, %arg2: memref<104x256xf32, #tpu.memory_space<vmem>>, %arg3: memref<16x128xf32, #tpu.memory_space<vmem>>) attributes {dimension_semantics = [], scalar_prefetch = 0 : i64, scratch_operands = 0 : i64, tpu.core_type = #tpu.core_type<tc>} {
    %c0 = arith.constant 0 : index
    %c0_0 = arith.constant 0 : index
    %0 = vector.load %arg0[%c0, %c0_0] : memref<16x32xf32, #tpu.memory_space<vmem>>, vector<16x32xf32>
    %c0_1 = arith.constant 0 : index
    %c0_2 = arith.constant 0 : index
    %1 = vector.load %arg2[%c0_1, %c0_2] : memref<104x256xf32, #tpu.memory_space<vmem>>, vector<32x256xf32>
    %c32 = arith.constant 32 : index
    %c0_3 = arith.constant 0 : index
    %2 = vector.load %arg2[%c32, %c0_3] : memref<104x256xf32, #tpu.memory_space<vmem>>, vector<1x256xf32>
    %c40 = arith.constant 40 : index
    %c0_4 = arith.constant 0 : index
    %3 = vector.load %arg2[%c40, %c0_4] : memref<104x256xf32, #tpu.memory_space<vmem>>, vector<32x128xf32>
    %c72 = arith.constant 72 : index
    %c0_5 = arith.constant 0 : index
    %4 = vector.load %arg2[%c72, %c0_5] : memref<104x256xf32, #tpu.memory_space<vmem>>, vector<32x32xf32>
    %cst = arith.constant dense<0.000000e+00> : vector<16x256xf32>
    %5 = tpu.matmul %0, %1, %cst {dimension_numbers = #tpu.dot_dimension_numbers<[1], [0], [0], [1], [0, 0, 1, 1], [], []>} : vector<16x32xf32>, vector<32x256xf32>, vector<16x256xf32> -> vector<16x256xf32>
    %6 = vector.broadcast %2 : vector<1x256xf32> to vector<16x256xf32>
    %7 = arith.addf %5, %6 : vector<16x256xf32>
    %8 = vector.extract_strided_slice %7 {offsets = [0, 128], sizes = [16, 128], strides = [1, 1]} : vector<16x256xf32> to vector<16x128xf32>
    %9 = vector.extract_strided_slice %7 {offsets = [0, 0], sizes = [16, 32], strides = [1, 1]} : vector<16x256xf32> to vector<16x32xf32>
    %10 = vector.extract_strided_slice %7 {offsets = [0, 32], sizes = [16, 32], strides = [1, 1]} : vector<16x256xf32> to vector<16x32xf32>
    %11 = vector.extract_strided_slice %7 {offsets = [0, 64], sizes = [16, 32], strides = [1, 1]} : vector<16x256xf32> to vector<16x32xf32>
    %12 = vector.extract_strided_slice %9 {offsets = [0, 0], sizes = [8, 32], strides = [1, 1]} : vector<16x32xf32> to vector<8x32xf32>
    %13 = tpu.concatenate %12, %12, %12, %12 in 0 : vector<8x32xf32>, vector<8x32xf32>, vector<8x32xf32>, vector<8x32xf32> -> vector<32x32xf32>
    %14 = arith.mulf %13, %4 : vector<32x32xf32>
    %15 = vector.extract_strided_slice %10 {offsets = [0, 0], sizes = [8, 32], strides = [1, 1]} : vector<16x32xf32> to vector<8x32xf32>
    %cst_6 = arith.constant dense<0.000000e+00> : vector<32x8xf32>
    %16 = tpu.matmul %14, %15, %cst_6 {dimension_numbers = #tpu.dot_dimension_numbers<[1], [1], [0], [0], [0, 0, 1, 0], [], []>} : vector<32x32xf32>, vector<8x32xf32>, vector<32x8xf32> -> vector<32x8xf32>
    %17 = vector.extract_strided_slice %9 {offsets = [8, 0], sizes = [8, 32], strides = [1, 1]} : vector<16x32xf32> to vector<8x32xf32>
    %18 = tpu.concatenate %17, %17, %17, %17 in 0 : vector<8x32xf32>, vector<8x32xf32>, vector<8x32xf32>, vector<8x32xf32> -> vector<32x32xf32>
    %19 = arith.mulf %18, %4 : vector<32x32xf32>
    %20 = vector.extract_strided_slice %10 {offsets = [8, 0], sizes = [8, 32], strides = [1, 1]} : vector<16x32xf32> to vector<8x32xf32>
    %cst_7 = arith.constant dense<0.000000e+00> : vector<32x8xf32>
    %21 = tpu.matmul %19, %20, %cst_7 {dimension_numbers = #tpu.dot_dimension_numbers<[1], [1], [0], [0], [0, 0, 1, 0], [], []>} : vector<32x32xf32>, vector<8x32xf32>, vector<32x8xf32> -> vector<32x8xf32>
    %22 = tpu.concatenate %16, %21 in 0 : vector<32x8xf32>, vector<32x8xf32> -> vector<64x8xf32>
    %c0_8 = arith.constant 0 : index
    %c0_9 = arith.constant 0 : index
    %23 = vector.load %arg1[%c0_8, %c0_9] : memref<64x8xf32, #tpu.memory_space<vmem>>, vector<64x8xf32>
    %24 = arith.addf %22, %23 : vector<64x8xf32>
    %cst_10 = arith.constant dense<0xFF800000> : vector<64xf32>
    %25 = vector.multi_reduction <maximumf>, %24, %cst_10 [1] : vector<64x8xf32> to vector<64xf32>
    %26 = vector.shape_cast %25 : vector<64xf32> to vector<64x1xf32>
    %27 = vector.broadcast %26 : vector<64x1xf32> to vector<64x8xf32>
    %28 = arith.subf %24, %27 : vector<64x8xf32>
    %29 = math.exp %28 : vector<64x8xf32>
    %cst_11 = arith.constant dense<0.000000e+00> : vector<64xf32>
    %30 = vector.multi_reduction <add>, %29, %cst_11 [1] : vector<64x8xf32> to vector<64xf32>
    %31 = vector.shape_cast %30 : vector<64xf32> to vector<64x1xf32>
    %32 = tpu.reciprocal %31 {approx = true} : vector<64x1xf32> -> vector<64x1xf32>
    %33 = vector.broadcast %32 : vector<64x1xf32> to vector<64x8xf32>
    %34 = arith.mulf %29, %33 : vector<64x8xf32>
    %35 = vector.extract_strided_slice %34 {offsets = [0, 0], sizes = [32, 8], strides = [1, 1]} : vector<64x8xf32> to vector<32x8xf32>
    %36 = vector.extract_strided_slice %11 {offsets = [0, 0], sizes = [8, 32], strides = [1, 1]} : vector<16x32xf32> to vector<8x32xf32>
    %cst_12 = arith.constant dense<0.000000e+00> : vector<32x32xf32>
    %37 = tpu.matmul %35, %36, %cst_12 {dimension_numbers = #tpu.dot_dimension_numbers<[1], [0], [0], [1], [0, 0, 1, 1], [], []>} : vector<32x8xf32>, vector<8x32xf32>, vector<32x32xf32> -> vector<32x32xf32>
    %38 = arith.mulf %37, %4 : vector<32x32xf32>
    %39 = vector.extract_strided_slice %38 {offsets = [0, 0], sizes = [8, 32], strides = [1, 1]} : vector<32x32xf32> to vector<8x32xf32>
    %40 = vector.extract_strided_slice %38 {offsets = [8, 0], sizes = [8, 32], strides = [1, 1]} : vector<32x32xf32> to vector<8x32xf32>
    %41 = arith.addf %39, %40 : vector<8x32xf32>
    %42 = vector.extract_strided_slice %38 {offsets = [16, 0], sizes = [8, 32], strides = [1, 1]} : vector<32x32xf32> to vector<8x32xf32>
    %43 = arith.addf %41, %42 : vector<8x32xf32>
    %44 = vector.extract_strided_slice %38 {offsets = [24, 0], sizes = [8, 32], strides = [1, 1]} : vector<32x32xf32> to vector<8x32xf32>
    %45 = arith.addf %43, %44 : vector<8x32xf32>
    %46 = vector.extract_strided_slice %34 {offsets = [32, 0], sizes = [32, 8], strides = [1, 1]} : vector<64x8xf32> to vector<32x8xf32>
    %47 = vector.extract_strided_slice %11 {offsets = [8, 0], sizes = [8, 32], strides = [1, 1]} : vector<16x32xf32> to vector<8x32xf32>
    %cst_13 = arith.constant dense<0.000000e+00> : vector<32x32xf32>
    %48 = tpu.matmul %46, %47, %cst_13 {dimension_numbers = #tpu.dot_dimension_numbers<[1], [0], [0], [1], [0, 0, 1, 1], [], []>} : vector<32x8xf32>, vector<8x32xf32>, vector<32x32xf32> -> vector<32x32xf32>
    %49 = arith.mulf %48, %4 : vector<32x32xf32>
    %50 = vector.extract_strided_slice %49 {offsets = [0, 0], sizes = [8, 32], strides = [1, 1]} : vector<32x32xf32> to vector<8x32xf32>
    %51 = vector.extract_strided_slice %49 {offsets = [8, 0], sizes = [8, 32], strides = [1, 1]} : vector<32x32xf32> to vector<8x32xf32>
    %52 = arith.addf %50, %51 : vector<8x32xf32>
    %53 = vector.extract_strided_slice %49 {offsets = [16, 0], sizes = [8, 32], strides = [1, 1]} : vector<32x32xf32> to vector<8x32xf32>
    %54 = arith.addf %52, %53 : vector<8x32xf32>
    %55 = vector.extract_strided_slice %49 {offsets = [24, 0], sizes = [8, 32], strides = [1, 1]} : vector<32x32xf32> to vector<8x32xf32>
    %56 = arith.addf %54, %55 : vector<8x32xf32>
    %57 = tpu.concatenate %45, %56 in 0 : vector<8x32xf32>, vector<8x32xf32> -> vector<16x32xf32>
    %cst_14 = arith.constant dense<0.000000e+00> : vector<16x128xf32>
    %58 = tpu.matmul %57, %3, %cst_14 {dimension_numbers = #tpu.dot_dimension_numbers<[1], [0], [0], [1], [0, 0, 1, 1], [], []>} : vector<16x32xf32>, vector<32x128xf32>, vector<16x128xf32> -> vector<16x128xf32>
    %59 = arith.addf %8, %58 : vector<16x128xf32>
    %60 = arith.negf %59 : vector<16x128xf32>
    %61 = math.exp %60 : vector<16x128xf32>
    %cst_15 = arith.constant 1.000000e+00 : f32
    %62 = vector.broadcast %cst_15 : f32 to vector<16x128xf32>
    %63 = arith.addf %62, %61 : vector<16x128xf32>
    %64 = arith.divf %62, %63 : vector<16x128xf32>
    %c0_16 = arith.constant 0 : index
    %c0_17 = arith.constant 0 : index
    %65 = vector.load %arg3[%c0_16, %c0_17] : memref<16x128xf32, #tpu.memory_space<vmem>>, vector<16x128xf32>
    tpu.vector_store %arg3[%c0_16, %c0_17], %64 {strides = array<i32>} : memref<16x128xf32, #tpu.memory_space<vmem>>, vector<16x128xf32>,
    return
  }
}

</mosaic_0001>

<bundles_post_ra>
// kernel: squeeze.3
= control target key start
LH: loop header
LB: loop body
LE: loop exit
PB: predicated region body
PF: predicated region fallthrough
CT: control target
= control target key end

     0   :  { %s77_s0 = inlined_call_operand.vmem [shape: f32[16], index: 0, kind: input, shape index: {}]   ;;  %s78_s1 = inlined_call_operand.hbm [shape: f32[2,8,1], index: 1, kind: output, shape index: {}]  }
   0x1   :  { %v6_v0 = vld [vmem:[%s77_s0] sm:$0x1] }
   0x2   :  { %2 = vsyncpa [#allocation1], 0  ;;  %7 = vst [vmem:[#allocation3] sm:$0x1] %v6_v0  ;;  %vm9_vm0 = vcmask 64512   ;;  %s59_s0 = smov 120  }
   0x3   :  { %s60_s8 = smov [#allocation0]  }
   0x4   :  { %s29_s9 = sshll.u32 %s60_s8, 4  ;;  %s30_s9 = int_to_ptr.vmem [resolvable:$true] %s29_s9 }
   0x5   :  { %s37_s10 = scalar_lea.vmem %s30_s9, 32  ;;  %p42_p1 = scmp.lt.s32.totalorder %s30_s9, %s30_s9 }
   0x6   :  { %p38_p0 = scmp.ne.s32.totalorder %s30_s9, %s37_s10  ;;  %p43_p2 = scmp.lt.s32.totalorder %s37_s10, %s37_s10 }
   0x8   :  { %p44_p3 = por %p43_p2, %p42_p1 }
   0x9   :  { %v11_v1 = vld [vmem:[#allocation3] sm:$0x1]  }
   0xa   :  { %v8_v2 = vld [vmem:[#allocation3] sm:$0x1]   ;;  %12 = vrot.lane.b32.xlu0 %v11_v1, %s59_s0  ;;  %p45_p4 = pnand %p44_p3, %p38_p0 }
   0xb   :  { %10 = vst.msk [vmem:[#allocation2] sm:$0x1] %vm9_vm0, %v8_v2  }
  0x7c   :  { %v13_v3 = vpop.permute.xlu0 %12  }
  0x7d   :  { %16 = vst.msk [vmem:[#allocation2 + $0x1] sm:$0x1] %vm9_vm0, %v13_v3  }
  0x84   :  { %v21_v4 = vld [vmem:[#allocation2] sm:$0x3] }
  0x85   :  { %24 = vst [vmem:[#allocation0] sm:$0x3] %v21_v4 }
  0x86   :  { %48 = shalt.err (!%p45_p4)
}
  0x87   :  { %32 = dma.vmem_to_hbm [thread:$0]  %s30_s9, 32, %s78_s1, [#allocation1]  }
  0x88   :  { %57 = dma.done.wait [#allocation1], 32  }
  0x89   :  { %58 = vsyncadd [#allocation1], 4294967264 }
  0x8a   :  { %34 = vsyncpa [#allocation1], 1 }

// kernel: trigger_extraction_forward.1
= control target key start
LH: loop header
LB: loop body
LE: loop exit
PB: predicated region body
PF: predicated region fallthrough
CT: control target
= control target key end

     0   :  { %8 = vsyncpa [#allocation3], 0  ;;  %s937_s12 = smov [#allocation2]   ;;  %s1093_s0 = inlined_call_operand.vmem [shape: f32[16,32], index: 0, kind: input, shape index: {}]   ;;  %s1094_s1 = inlined_call_operand.vmem [shape: f32[64,8], index: 1, kind: input, shape index: {}]   ;;  %s1095_s2 = inlined_call_operand.hbm [shape: f32[104,256], index: 2, kind: input, shape index: {}]   ;;  %s1096_s3 = inlined_call_operand.vmem [shape: f32[16,128], index: 3, kind: output, shape index: {}]  }
   0x1   :  { %s18_s13 = sshll.u32 %s937_s12, 4  ;;  %s19_s13 = int_to_ptr.vmem [resolvable:$true] %s18_s13 }
   0x2   :  { %s923_s14 = scalar_lea.vmem %s19_s13, 3328  ;;  %p928_p1 = scmp.lt.s32.totalorder %s19_s13, %s19_s13 }
   0x3   :  { %p924_p0 = scmp.ne.s32.totalorder %s19_s13, %s923_s14  ;;  %p929_p2 = scmp.lt.s32.totalorder %s923_s14, %s923_s14 }
   0x5   :  { %p930_p3 = por %p929_p2, %p928_p1 }
   0x7   :  { %p931_p4 = pnand %p930_p3, %p924_p0 }
   0x9   :  { %934 = shalt.err (!%p931_p4)
}
   0xa   :  { %s938_s15 = smov 256   ;;  %s939_s16 = smov 16  }
   0xb   :  { %24 = dma.hbm_to_vmem [thread:$0]  %s1095_s2, 3328, %s19_s13, [#allocation3], %s938_s15, %s938_s15, %s939_s16  }
   0xc   :  { %935 = dma.done.wait [#allocation3], 3328  }
   0xd   :  { %936 = vsyncadd [#allocation3], 4294963968  ;;  %v940_v0 = vmov 0.0   ;;  %v37_v1 = vld [vmem:[#allocation2 + $0x38] sm:$0xff]  ;;  %v36_v2 = vld [vmem:[#allocation2 + $0x30] sm:$0xff]  ;;  %vm59_vm0 = vcmask 261120   ;;  %v49_v11 = vlaneseq }
   0xe   :  { %130 = vmatprep.mubr.f32.mxu0 %v940_v0  ;;  %v35_v3 = vld [vmem:[#allocation2 + $0x28] sm:$0xff]  ;;  %90 = vmatprep.subr.mxu0 %v37_v1  ;;  %v34_v4 = vld [vmem:[#allocation2 + $0x20] sm:$0xff]  ;;  %v33_v5 = vld [vmem:[#allocation2 + $0x18] sm:$0xff]  ;;  %s941_s22 = smov 96   ;;  %vm371_vm1 = vcmask 64512  }
   0xf   :  { %91 = vmatpush1.msra.mxu0 %v36_v2  ;;  %v32_v6 = vld [vmem:[#allocation2 + $0x10] sm:$0xff]  ;;  %v31_v7 = vld [vmem:[#allocation2 + $0x8] sm:$0xff]  ;;  %v30_v8 = vld [vmem:[#allocation2] sm:$0xff]  ;;  %v974_v12 = vshrl.u32 %v49_v11, 7 }
  0x10   :  { %92 = vmatprep.subr.mxu0 %v35_v3  ;;  %v28_v9 = vld [vmem:[%s1093_s0] sm:$0xff]  ;;  %v29_v10 = vld [vmem:[%s1093_s0 + $0x8] sm:$0xff]  ;;  %v980_v17 = vld [vmem:[#allocation2 + $0x90] sm:$0xff] }
  0x11   :  { %93 = vmatpush1.msra.mxu0 %v34_v4  ;;  %v51_v13 = vsub.s32 0, %v974_v12  ;;  %v977_v14 = vld [vmem:[#allocation2 + $0x40] ss:$8 sm:$0x3]  ;;  %v996_v25 = vld [vmem:[#allocation2 + $0xb0] sm:$0xff]  ;;  %v358_v54 = vld [vmem:[%s1094_s1 + $0x18] sm:$0xff] }
  0x12   :  { %94 = vmatprep.subr.mxu0 %v33_v5  ;;  %v993_v24 = vld [vmem:[#allocation2 + $0xa0] sm:$0xff]  ;;  %v356_v35 = vld [vmem:[%s1094_s1 + $0x8] sm:$0xff]  ;;  %v357_v46 = vld [vmem:[%s1094_s1 + $0x10] sm:$0xff] }
  0x13   :  { %95 = vmatpush1.msra.mxu0 %v32_v6  ;;  %v52_v15 = vrot.slane %v977_v14, %v51_v13  ;;  %v1003_v29 = vld [vmem:[#allocation2 + $0xc0] sm:$0xff]  ;;  %v360_v44 = vld [vmem:[%s1094_s1 + $0x28] sm:$0xff]  ;;  %v361_v60 = vld [vmem:[%s1094_s1 + $0x30] sm:$0xff] }
  0x14   :  { %96 = vmatprep.subr.mxu0 %v31_v7  ;;  %v355_v37 = vld [vmem:[%s1094_s1] sm:$0xff]  ;;  %v362_v63 = vld [vmem:[%s1094_s1 + $0x38] sm:$0xff] }
  0x15   :  { %97 = vmatpush1.msra.mxu0 %v30_v8  ;;  %v359_v48 = vld [vmem:[%s1094_s1 + $0x20] sm:$0xff]  ;;  %s942_s1 = smov 64  }
  0x16   :  { %776 = vmatmul.mubr.msk.f32.vlgmr.msra.gmra.mxu0 %vm59_vm0, %v28_v9 }
  0x17   :  { %136 = vmatprep.mubr.f32.mxu0 %v940_v0 }
  0x1a   :  { %777 = vmatmul.mubr.msk.f32.gmra.mxu0 %vm59_vm0, %v29_v10 }
  0xd6   :  { %v132_v16 = vpop.f32.mrf.mxu0 }
  0xd7   :  { %v982_v18 = vadd.f32 %v132_v16, %v52_v15 }
  0xd8   :  { %v984_v19 = vpop.f32.mrf.mxu0 }
  0xd9   :  { %148 = vrot.lane.b32.xlu0 %v982_v18, %s941_s22  ;;  %v143_v20 = vmul.f32 %v982_v18, %v980_v17  ;;  %v144_v26 = vmul.f32 %v982_v18, %v993_v24  ;;  %v145_v28 = vmul.f32 %v982_v18, %v996_v25  ;;  %v146_v30 = vmul.f32 %v982_v18, %v1003_v29 }
  0xda   :  { %v138_v21 = vpop.f32.mrf.mxu0 }
  0xdb   :  { %v989_v22 = vadd.f32 %v138_v21, %v52_v15  ;;  %828 = vmatprep.mubr.msk.f32.mxu1 %vm59_vm0, %v143_v20 }
  0xdd   :  { %254 = vrot.lane.b32.xlu0 %v989_v22, %s941_s22  ;;  %v249_v31 = vmul.f32 %v989_v22, %v980_v17  ;;  %v250_v32 = vmul.f32 %v989_v22, %v993_v24  ;;  %v251_v33 = vmul.f32 %v989_v22, %v996_v25  ;;  %v252_v34 = vmul.f32 %v989_v22, %v1003_v29 }
 0x14b   :  { %v149_v23 = vpop.permute.xlu0 %148 }
 0x14c   :  { %826 = vmatprep.subr.msk.mxu1 %vm59_vm0, %v149_v23 }
 0x14d   :  { %827 = vmatpush3.xpose.msk.msra.mxu1 %vm59_vm0, %v149_v23 }
 0x14f   :  { %v255_v27 = vpop.permute.xlu0 %254 }
 0x150   :  { %829 = vmatmul.mubr.msk.f32.vlgmr.msra.gmra.mxu1 %vm59_vm0, %v144_v26  ;;  %834 = vmatprep.subr.msk.mxu1 %vm59_vm0, %v255_v27 }
 0x151   :  { %831 = vmatprep.mubr.msk.f32.mxu1 %vm59_vm0, %v145_v28  ;;  %835 = vmatpush3.xpose.msk.msra.mxu1 %vm59_vm0, %v255_v27 }
 0x154   :  { %832 = vmatmul.mubr.msk.f32.gmra.mxu1 %vm59_vm0, %v146_v30 }
 0x155   :  { %836 = vmatprep.mubr.msk.f32.mxu1 %vm59_vm0, %v249_v31 }
 0x158   :  { %837 = vmatmul.mubr.msk.f32.vlgmr.msra.gmra.mxu1 %vm59_vm0, %v250_v32 }
 0x159   :  { %839 = vmatprep.mubr.msk.f32.mxu1 %vm59_vm0, %v251_v33 }
 0x15c   :  { %840 = vmatmul.mubr.msk.f32.gmra.mxu1 %vm59_vm0, %v252_v34 }
 0x210   :  { %v830_v36 = vpop.f32.mrf.mxu1 }
 0x211   :  { %v364_v38 = vadd.f32 %v830_v36, %v356_v35 }
 0x212   :  { %v230_v39 = vpop.f32.mrf.mxu1 }
 0x213   :  { %v363_v40 = vadd.f32 %v355_v37, %v230_v39  ;;  %v375_v41 = vsel %vm371_vm1, %v364_v38, -inf }
 0x214   :  { %376 = vmax.xlane.f32.xlu1 %v375_v41  ;;  %v833_v42 = vpop.f32.mrf.mxu1 }
 0x215   :  { %v372_v45 = vsel %vm371_vm1, %v363_v40, -inf  ;;  %v366_v57 = vadd.f32 %v833_v42, %v358_v54 }
 0x216   :  { %v240_v43 = vpop.f32.mrf.mxu1 }
 0x217   :  { %v365_v51 = vadd.f32 %v357_v46, %v240_v43  ;;  %v381_v62 = vsel %vm371_vm1, %v366_v57, -inf }
 0x218   :  { %373 = vmax.xlane.f32.xlu1 %v372_v45  ;;  %v838_v47 = vpop.f32.mrf.mxu1 }
 0x219   :  { %v368_v49 = vadd.f32 %v838_v47, %v360_v44  ;;  %v378_v58 = vsel %vm371_vm1, %v365_v51, -inf }
 0x21a   :  { %v336_v50 = vpop.f32.mrf.mxu1 }
 0x21b   :  { %v367_v52 = vadd.f32 %v359_v48, %v336_v50  ;;  %v387_v53 = vsel %vm371_vm1, %v368_v49, -inf }
 0x21c   :  { %388 = vmax.xlane.f32.xlu1 %v387_v53  ;;  %v841_v55 = vpop.f32.mrf.mxu1 }
 0x21d   :  { %v384_v56 = vsel %vm371_vm1, %v367_v52, -inf  ;;  %v370_v0 = vadd.f32 %v841_v55, %v362_v63 }
 0x21e   :  { %385 = vmax.xlane.f32.xlu0 %v384_v56  ;;  %v346_v59 = vpop.f32.mrf.mxu1 }
 0x21f   :  { %v369_v61 = vadd.f32 %v361_v60, %v346_v59  ;;  %v393_v2 = vsel %vm371_vm1, %v370_v0, -inf }
 0x220   :  { %379 = vmax.xlane.f32.xlu1 %v378_v58 }
 0x221   :  { %v390_v1 = vsel %vm371_vm1, %v369_v61, -inf }
 0x224   :  { %382 = vmax.xlane.f32.xlu1 %v381_v62 }
 0x228   :  { %391 = vmax.xlane.f32.xlu1 %v390_v1 }
 0x22c   :  { %394 = vmax.xlane.f32.xlu1 %v393_v2 }
 0x29d   :  { %v377_v3 = vpop.xlane.xlu1 %376 }
 0x29e   :  { %v397_v4 = vsub.f32 %v364_v38, %v377_v3 }
 0x2a0   :  { %v406_v5 = vmul.f32 1.442695, %v397_v4 }
 0x2a1   :  { %v374_v6 = vpop.xlane.xlu1 %373 }
 0x2a2   :  { %875 = vpow2.f32 %v406_v5  ;;  %v396_v7 = vsub.f32 %v363_v40, %v374_v6 }
 0x2a4   :  { %v404_v8 = vmul.f32 1.442695, %v396_v7 }
 0x2a5   :  { %v389_v9 = vpop.xlane.xlu1 %388 }
 0x2a6   :  { %877 = vpow2.f32 %v404_v8  ;;  %v401_v16 = vsub.f32 %v368_v49, %v389_v9 }
 0x2a7   :  { %v386_v10 = vpop.xlane.xlu0 %385 }
 0x2a8   :  { %v400_v11 = vsub.f32 %v367_v52, %v386_v10  ;;  %v414_v28 = vmul.f32 1.442695, %v401_v16  ;;  %v41_v16 = vld [vmem:[#allocation2 + $0x60] sm:$0xff] }
 0x2a9   :  { %v380_v13 = vpop.xlane.xlu1 %379 }
 0x2aa   :  { %v398_v15 = vsub.f32 %v365_v51, %v380_v13  ;;  %v412_v20 = vmul.f32 1.442695, %v400_v11  ;;  %v43_v13 = vld [vmem:[#allocation2 + $0x80] sm:$0xff] }
 0x2ac   :  { %v408_v21 = vmul.f32 1.442695, %v398_v15  ;;  %v42_v15 = vld [vmem:[#allocation2 + $0x70] sm:$0xff] }
 0x2ad   :  { %v383_v23 = vpop.xlane.xlu1 %382 }
 0x2ae   :  { %879 = vpow2.f32 %v408_v21  ;;  %v399_v26 = vsub.f32 %v366_v57, %v383_v23  ;;  %v140_v21 = vpop.f32.mrf.mxu0 }
 0x2af   :  { %v876_v27 = vpop.eup %875  ;;  %881 = vpow2.f32 %v412_v20  ;;  %v40_v20 = vld [vmem:[#allocation2 + $0x50] sm:$0xff] }
 0x2b0   :  { %v410_v30 = vmul.f32 1.442695, %v399_v26  ;;  %v423_v31 = vsel %vm371_vm1, %v876_v27, 0.0 }
 0x2b1   :  { %424 = vadd.xlane.f32.xlu1 %v423_v31  ;;  %v392_v32 = vpop.xlane.xlu1 %391 }
 0x2b2   :  { %883 = vpow2.f32 %v410_v30  ;;  %v402_v33 = vsub.f32 %v369_v61, %v392_v32 }
 0x2b3   :  { %v878_v34 = vpop.eup %877  ;;  %885 = vpow2.f32 %v414_v28 }
 0x2b4   :  { %v416_v35 = vmul.f32 1.442695, %v402_v33  ;;  %v420_v36 = vsel %vm371_vm1, %v878_v34, 0.0 }
 0x2b5   :  { %421 = vadd.xlane.f32.xlu1 %v420_v36  ;;  %v395_v37 = vpop.xlane.xlu1 %394 }
 0x2b6   :  { %887 = vpow2.f32 %v416_v35  ;;  %v403_v38 = vsub.f32 %v370_v0, %v395_v37 }
 0x2b8   :  { %v418_v39 = vmul.f32 1.442695, %v403_v38 }
 0x2ba   :  { %889 = vpow2.f32 %v418_v39 }
 0x2bb   :  { %v880_v40 = vpop.eup %879 }
 0x2bc   :  { %v426_v41 = vsel %vm371_vm1, %v880_v40, 0.0  ;;  %v882_v42 = vpop.eup %881 }
 0x2bd   :  { %427 = vadd.xlane.f32.xlu1 %v426_v41  ;;  %v432_v45 = vsel %vm371_vm1, %v882_v42, 0.0 }
 0x2bf   :  { %v884_v43 = vpop.eup %883 }
 0x2c0   :  { %v429_v44 = vsel %vm371_vm1, %v884_v43, 0.0  ;;  %v886_v46 = vpop.eup %885 }
 0x2c1   :  { %430 = vadd.xlane.f32.xlu0 %v429_v44  ;;  %433 = vadd.xlane.f32.xlu1 %v432_v45  ;;  %v435_v48 = vsel %vm371_vm1, %v886_v46, 0.0 }
 0x2c3   :  { %v888_v47 = vpop.eup %887 }
 0x2c4   :  { %v438_v49 = vsel %vm371_vm1, %v888_v47, 0.0 }
 0x2c5   :  { %436 = vadd.xlane.f32.xlu0 %v435_v48  ;;  %439 = vadd.xlane.f32.xlu1 %v438_v49  ;;  %v55_v48 = vsub.s32 1, %v974_v12 }
 0x2c7   :  { %v890_v50 = vpop.eup %889  ;;  %v56_v49 = vrot.slane %v977_v14, %v55_v48 }
 0x2c8   :  { %v441_v51 = vsel %vm371_vm1, %v890_v50, 0.0 }
 0x2c9   :  { %442 = vadd.xlane.f32.xlu0 %v441_v51 }
 0x2d6   :  { %460 = vrot.lane.b32.xlu1 %v982_v18, %s942_s1 }
 0x2df   :  { %567 = vrot.lane.b32.xlu0 %v989_v22, %s942_s1 }
 0x33a   :  { %v425_v52 = vpop.xlane.xlu1 %424 }
 0x33e   :  { %v422_v53 = vpop.xlane.xlu1 %421 }
 0x33f   :  { %891 = vrcp.f32 %v422_v53 }
 0x340   :  { %893 = vrcp.f32 %v425_v52 }
 0x346   :  { %v428_v54 = vpop.xlane.xlu1 %427 }
 0x347   :  { %895 = vrcp.f32 %v428_v54 }
 0x34a   :  { %v431_v55 = vpop.xlane.xlu0 %430  ;;  %v434_v56 = vpop.xlane.xlu1 %433 }
 0x34b   :  { %897 = vrcp.f32 %v431_v55 }
 0x34c   :  { %v892_v57 = vpop.eup %891  ;;  %899 = vrcp.f32 %v434_v56 }
 0x34d   :  { %v452_v58 = vmul.f32 %v892_v57, %v878_v34  ;;  %v894_v18 = vpop.eup %893 }
 0x34e   :  { %v437_v59 = vpop.xlane.xlu0 %436  ;;  %v440_v60 = vpop.xlane.xlu1 %439  ;;  %v453_v62 = vmul.f32 %v894_v18, %v876_v27 }
 0x34f   :  { %901 = vrcp.f32 %v437_v59  ;;  %844 = vmatprep.mubr.msk.f32.mxu0 %vm371_vm1, %v452_v58 }
 0x350   :  { %903 = vrcp.f32 %v440_v60 }
 0x352   :  { %v443_v22 = vpop.xlane.xlu0 %442  ;;  %v461_v61 = vpop.permute.xlu1 %460 }
 0x353   :  { %905 = vrcp.f32 %v443_v22  ;;  %842 = vmatprep.subr.mxu0 %v461_v61 }
 0x354   :  { %v896_v63 = vpop.eup %895  ;;  %843 = vmatpush3.msra.mxu0 %v461_v61 }
 0x355   :  { %845 = vmatmul.mubr.msk.f32.vlgmr.msra.gmra.mxu0 %vm371_vm1, %v453_v62  ;;  %v454_v0 = vmul.f32 %v896_v63, %v880_v40  ;;  %858 = vmatprep.subr.mxu0 %v43_v13 }
 0x356   :  { %v568_v1 = vpop.permute.xlu0 %567  ;;  %859 = vmatpush3.msra.mxu0 %v43_v13 }
 0x357   :  { %847 = vmatprep.mubr.msk.f32.mxu0 %vm371_vm1, %v454_v0  ;;  %850 = vmatprep.subr.mxu1 %v568_v1 }
 0x358   :  { %v898_v2 = vpop.eup %897  ;;  %851 = vmatpush3.msra.mxu1 %v568_v1  ;;  %860 = vmatprep.subr.mxu0 %v42_v15 }
 0x359   :  { %v900_v3 = vpop.eup %899  ;;  %v455_v4 = vmul.f32 %v898_v2, %v884_v43  ;;  %861 = vmatpush3.msra.mxu0 %v42_v15 }
 0x35a   :  { %v456_v5 = vmul.f32 %v900_v3, %v882_v42  ;;  %862 = vmatprep.subr.mxu0 %v41_v16 }
 0x35b   :  { %848 = vmatmul.mubr.msk.f32.gmra.mxu0 %vm371_vm1, %v455_v4 }
 0x35c   :  { %v902_v6 = vpop.eup %901  ;;  %852 = vmatprep.mubr.msk.f32.mxu1 %vm371_vm1, %v456_v5  ;;  %863 = vmatpush3.msra.mxu0 %v41_v16 }
 0x35d   :  { %v904_v7 = vpop.eup %903  ;;  %v457_v8 = vmul.f32 %v902_v6, %v886_v46  ;;  %864 = vmatprep.subr.mxu0 %v40_v20 }
 0x35e   :  { %v458_v9 = vmul.f32 %v904_v7, %v888_v47  ;;  %865 = vmatpush3.msra.mxu0 %v40_v20 }
 0x35f   :  { %853 = vmatmul.mubr.msk.f32.vlgmr.msra.gmra.mxu1 %vm371_vm1, %v457_v8 }
 0x360   :  { %v906_v10 = vpop.eup %905  ;;  %855 = vmatprep.mubr.msk.f32.mxu1 %vm371_vm1, %v458_v9 }
 0x361   :  { %v459_v11 = vmul.f32 %v906_v10, %v890_v50 }
 0x363   :  { %856 = vmatmul.mubr.msk.f32.gmra.mxu1 %vm371_vm1, %v459_v11 }
 0x415   :  { %v846_v23 = vpop.f32.mrf.mxu0 }
 0x416   :  { %v561_v30 = vmul.f32 %v846_v23, %v993_v24 }
 0x417   :  { %v541_v26 = vpop.f32.mrf.mxu0 }
 0x418   :  { %v560_v27 = vmul.f32 %v541_v26, %v980_v17 }
 0x41a   :  { %v564_v32 = vadd.f32 %v561_v30, %v560_v27 }
 0x41b   :  { %v849_v28 = vpop.f32.mrf.mxu0 }
 0x41c   :  { %v563_v35 = vmul.f32 %v849_v28, %v1003_v29 }
 0x41d   :  { %v551_v31 = vpop.f32.mrf.mxu0 }
 0x41e   :  { %v562_v33 = vmul.f32 %v551_v31, %v996_v25 }
 0x41f   :  { %v854_v34 = vpop.f32.mrf.mxu1 }
 0x420   :  { %v565_v36 = vadd.f32 %v564_v32, %v562_v33  ;;  %v668_v41 = vmul.f32 %v854_v34, %v993_v24  ;;  %v135_v24 = vadd.f32 %v984_v19, %v56_v49 }
 0x421   :  { %v648_v37 = vpop.f32.mrf.mxu1 }
 0x422   :  { %v566_v38 = vadd.f32 %v565_v36, %v563_v35  ;;  %v667_v39 = vmul.f32 %v648_v37, %v980_v17  ;;  %v141_v17 = vadd.f32 %v140_v21, %v56_v49 }
 0x423   :  { %v857_v40 = vpop.f32.mrf.mxu1 }
 0x424   :  { %866 = vmatprep.mubr.msk.f32.mxu0 %vm59_vm0, %v566_v38  ;;  %v671_v43 = vadd.f32 %v668_v41, %v667_v39  ;;  %v670_v45 = vmul.f32 %v857_v40, %v1003_v29 }
 0x425   :  { %v658_v42 = vpop.f32.mrf.mxu1 }
 0x426   :  { %v669_v44 = vmul.f32 %v658_v42, %v996_v25 }
 0x428   :  { %v672_v46 = vadd.f32 %v671_v43, %v669_v44 }
 0x42a   :  { %v673_v47 = vadd.f32 %v672_v46, %v670_v45 }
 0x42c   :  { %867 = vmatmul.mubr.msk.f32.vlgmr.msra.gmra.mxu0 %vm59_vm0, %v673_v47 }
 0x4ec   :  { %v868_v50 = vpop.f32.mrf.mxu0 }
 0x4ed   :  { %v756_v51 = vadd.f32 %v868_v50, %v141_v17 }
 0x4ee   :  { %v746_v52 = vpop.f32.mrf.mxu0 }
 0x4ef   :  { %v799_v53 = vmul.f32 -1.442695, %v756_v51  ;;  %v755_v54 = vadd.f32 %v746_v52, %v135_v24 }
 0x4f1   :  { %907 = vpow2.f32 %v799_v53  ;;  %v798_v25 = vmul.f32 -1.442695, %v755_v54 }
 0x4f3   :  { %909 = vpow2.f32 %v798_v25 }
 0x4fe   :  { %v908_v29 = vpop.eup %907 }
 0x4ff   :  { %v764_v55 = vadd.f32 1.0, %v908_v29 }
 0x500   :  { %v910_v56 = vpop.eup %909 }
 0x501   :  { %911 = vrcp.f32 %v764_v55  ;;  %v763_v57 = vadd.f32 1.0, %v910_v56 }
 0x503   :  { %913 = vrcp.f32 %v763_v57 }
 0x50e   :  { %v912_v12 = vpop.eup %911 }
 0x50f   :  { %770 = vst [vmem:[%s1096_s3 + $0x8] sm:$0xff] %v912_v12 }
 0x510   :  { %v914_v14 = vpop.eup %913 }
 0x511   :  { %769 = vst [vmem:[%s1096_s3] sm:$0xff] %v914_v14 }
 0x512   :  { %775 = vsyncpa [#allocation3], 1 }

</bundles_post_ra>
